<compile_context>
chip_gen: v7x
topology: tpu7x:2x2x1
jax: 0.10.0
libtpu: 0.0.40
codegen_flags: <defaults>
</compile_context>

<pallas_src>
import jax
import jax.numpy as jnp
from jax.experimental import pallas as pl
from jax.experimental.pallas import tpu as pltpu


def _local_loss_kernel(pred_ref, label_ref, mats_ref, out_ref):
    # pred_ref / label_ref : (B, C, T)   current HW tile
    # mats_ref             : (B, M, T)   current HW tile
    # out_ref              : (1, B, T)   per-tile partial products (f32)
    p = pred_ref[...].astype(jnp.float32)
    l = label_ref[...].astype(jnp.float32)
    m = mats_ref[...].astype(jnp.float32)

    d = jnp.abs(p - l)                                  # (B, C, T)
    msum = jnp.sum(jnp.abs(m), axis=1, keepdims=True)   # (B, 1, T)  sum over M masks
    out_ref[0] = jnp.sum(d * msum, axis=1)              # (B, T)     sum over C


def _pick_tile(hw, max_tile=2048):
    """Largest multiple of 128 that divides hw (capped), else the full extent."""
    if hw % 128 != 0:
        # TODO(synk): pad HW to a multiple of 128 in the wrapper for unmasked lane ops.
        return hw
    tile = 128
    t = 256
    while t <= min(hw, max_tile):
        if hw % t == 0:
            tile = t
        t += 128
    return tile


def local_loss(pred, label, mats):
    """pred, label: (B, C, H, W); mats: (B, M, H, W). Returns scalar f32 loss."""
    B, C, H, W = pred.shape
    M = mats.shape[1]
    HW = H * W

    # Free (contiguous) reshapes only: no transpose pass, no dtype-cast pass in HBM.
    pred_f = pred.reshape(B, C, HW)
    label_f = label.reshape(B, C, HW)
    mats_f = mats.reshape(B, M, HW)

    tile = _pick_tile(HW)
    num_tiles = HW // tile

    # Explicit scoped-VMEM budget: double-buffered in/out blocks + generous headroom,
    # clamped to a limit that is safe on v5e/v6e (128 MiB) and v7x (64 MiB).
    in_bytes = jnp.dtype(pred.dtype).itemsize
    mat_bytes = jnp.dtype(mats.dtype).itemsize
    block_bytes = (2 * B * C * tile * in_bytes
                   + B * M * tile * mat_bytes
                   + B * tile * 4)
    vmem_limit = int(min(max(4 * block_bytes + (4 << 20), 16 << 20), 32 << 20))

    partials = pl.pallas_call(
        _local_loss_kernel,
        out_shape=jax.ShapeDtypeStruct((num_tiles, B, tile), jnp.float32),
        grid_spec=pltpu.PrefetchScalarGridSpec(
            num_scalar_prefetch=0,
            grid=(num_tiles,),
            in_specs=[
                pl.BlockSpec((B, C, tile), lambda t: (0, 0, t)),   # pred HW tile
                pl.BlockSpec((B, C, tile), lambda t: (0, 0, t)),   # label HW tile
                pl.BlockSpec((B, M, tile), lambda t: (0, 0, t)),   # mats HW tile
            ],
            out_specs=pl.BlockSpec((1, B, tile), lambda t: (t, 0, 0)),
        ),
        compiler_params=pltpu.CompilerParams(
            dimension_semantics=("parallel",),
            vmem_limit_bytes=vmem_limit,
        ),
    )(pred_f, label_f, mats_f)

    # Single final cross-lane reduce + single scale (L1Loss mean denominator is the
    # same B*C*H*W for every mask i).
    inv_denom = 1.0 / float(B * C * HW)
    return jnp.sum(partials) * jnp.float32(inv_denom)


def local_loss_ref(pred, label, mats):
    """Plain-JAX reference mirroring the PyTorch loop."""
    loss = jnp.float32(0.0)
    for i in range(mats.shape[1]):
        mat = mats[:, i, :, :][:, None, :, :]
        mpred = pred * mat
        mlabel = label * mat
        loss = loss + jnp.mean(jnp.abs(mpred - mlabel))
    return loss


if __name__ == "__main__":
    key = jax.random.PRNGKey(0)
    k1, k2, k3 = jax.random.split(key, 3)

    B, C, H, W = 2, 4, 16, 16
    M = 3  # number of composition masks

    pred = jax.random.normal(k1, (B, C, H, W), dtype=jnp.float32)
    label = jax.random.normal(k2, (B, C, H, W), dtype=jnp.float32)
    mats = jax.random.uniform(k3, (B, M, H, W), dtype=jnp.float32)

    loss = jax.block_until_ready(local_loss(pred, label, mats))
    ref = jax.block_until_ready(local_loss_ref(pred, label, mats))

    assert jnp.allclose(loss, ref, rtol=1e-5, atol=1e-6), (loss, ref)
    print("KERNEL_OK")
</pallas_src>

<mosaic_0001>
module attributes {stable_mosaic.version = 11 : i64} {
  func.func @_local_loss_kernel(%arg0: i32, %arg1: memref<2x4x256xf32, #tpu.memory_space<vmem>>, %arg2: memref<2x4x256xf32, #tpu.memory_space<vmem>>, %arg3: memref<2x3x256xf32, #tpu.memory_space<vmem>>, %arg4: memref<1x2x256xf32, #tpu.memory_space<vmem>>) attributes {dimension_semantics = [#tpu.dimension_semantics<parallel>], iteration_bounds = array<i64: 1>, scalar_prefetch = 0 : i64, scratch_operands = 0 : i64, tpu.core_type = #tpu.core_type<tc>, window_params = [{transform_indices = @transform_0, window_bounds = array<i64: 2, 4, 256>}, {transform_indices = @transform_1, window_bounds = array<i64: 2, 4, 256>}, {transform_indices = @transform_2, window_bounds = array<i64: 2, 3, 256>}, {transform_indices = @transform_3, window_bounds = array<i64: 1, 2, 256>}]} {
    %c0 = arith.constant 0 : index
    %c0_0 = arith.constant 0 : index
    %c0_1 = arith.constant 0 : index
    %0 = vector.load %arg1[%c0, %c0_0, %c0_1] : memref<2x4x256xf32, #tpu.memory_space<vmem>>, vector<2x4x256xf32>
    %c0_2 = arith.constant 0 : index
    %c0_3 = arith.constant 0 : index
    %c0_4 = arith.constant 0 : index
    %1 = vector.load %arg2[%c0_2, %c0_3, %c0_4] : memref<2x4x256xf32, #tpu.memory_space<vmem>>, vector<2x4x256xf32>
    %c0_5 = arith.constant 0 : index
    %c0_6 = arith.constant 0 : index
    %c0_7 = arith.constant 0 : index
    %2 = vector.load %arg3[%c0_5, %c0_6, %c0_7] : memref<2x3x256xf32, #tpu.memory_space<vmem>>, vector<2x3x256xf32>
    %3 = arith.subf %0, %1 : vector<2x4x256xf32>
    %4 = math.absf %3 : vector<2x4x256xf32>
    %5 = math.absf %2 : vector<2x3x256xf32>
    %cst = arith.constant dense<0.000000e+00> : vector<2x256xf32>
    %6 = vector.multi_reduction <add>, %5, %cst [1] : vector<2x3x256xf32> to vector<2x256xf32>
    %7 = vector.shape_cast %6 : vector<2x256xf32> to vector<2x1x256xf32>
    %8 = vector.broadcast %7 : vector<2x1x256xf32> to vector<2x4x256xf32>
    %9 = arith.mulf %4, %8 : vector<2x4x256xf32>
    %cst_8 = arith.constant dense<0.000000e+00> : vector<2x256xf32>
    %10 = vector.multi_reduction <add>, %9, %cst_8 [1] : vector<2x4x256xf32> to vector<2x256xf32>
    %c0_9 = arith.constant 0 : index
    %c0_10 = arith.constant 0 : index
    %c0_11 = arith.constant 0 : index
    %11 = vector.load %arg4[%c0_9, %c0_10, %c0_11] : memref<1x2x256xf32, #tpu.memory_space<vmem>>, vector<1x2x256xf32>
    %12 = vector.shape_cast %11 : vector<1x2x256xf32> to vector<2x256xf32>
    %13 = vector.shape_cast %10 : vector<2x256xf32> to vector<1x2x256xf32>
    tpu.vector_store %arg4[%c0_9, %c0_10, %c0_11], %13 {strides = array<i32>} : memref<1x2x256xf32, #tpu.memory_space<vmem>>, vector<1x2x256xf32>,
    return
  }
  func.func @transform_0(%arg0: i32) -> (i32, i32, i32) {
    %c0_i32 = arith.constant 0 : i32
    %c0_i32_0 = arith.constant 0 : i32
    %c0_i32_1 = arith.constant 0 : i32
    return %c0_i32, %c0_i32_0, %arg0 : i32, i32, i32
  }
  func.func @transform_1(%arg0: i32) -> (i32, i32, i32) {
    %c0_i32 = arith.constant 0 : i32
    %c0_i32_0 = arith.constant 0 : i32
    %c0_i32_1 = arith.constant 0 : i32
    return %c0_i32, %c0_i32_0, %arg0 : i32, i32, i32
  }
  func.func @transform_2(%arg0: i32) -> (i32, i32, i32) {
    %c0_i32 = arith.constant 0 : i32
    %c0_i32_0 = arith.constant 0 : i32
    %c0_i32_1 = arith.constant 0 : i32
    return %c0_i32, %c0_i32_0, %arg0 : i32, i32, i32
  }
  func.func @transform_3(%arg0: i32) -> (i32, i32, i32) {
    %c0_i32 = arith.constant 0 : i32
    %c0_i32_0 = arith.constant 0 : i32
    %c0_i32_1 = arith.constant 0 : i32
    return %arg0, %c0_i32, %c0_i32_0 : i32, i32, i32
  }
}

</mosaic_0001>

<bundles_post_ra>
// kernel: tpu_custom_call.1
= control target key start
LH: loop header
LB: loop body
LE: loop exit
PB: predicated region body
PF: predicated region fallthrough
CT: control target
= control target key end

     0   :  { %8 = vsyncpa [#allocation3], 0  ;;  %s285_s0 = inlined_call_operand.vmem [shape: f32[2,4,256], index: 0, kind: input, shape index: {}]   ;;  %s286_s1 = inlined_call_operand.hbm [shape: f32[2,4,256], index: 1, kind: input, shape index: {}]   ;;  %s287_s2 = inlined_call_operand.vmem [shape: f32[2,3,256], index: 2, kind: input, shape index: {}]   ;;  %s288_s3 = inlined_call_operand.hbm [shape: f32[1,2,256], index: 3, kind: output, shape index: {}]  }
   0x1   :  { %9 = vsyncpa [#allocation4], 0  ;;  %s224_s12 = smov [#allocation2]   ;;  %s176_s16 = scalar_lea.hbm %s286_s1, 256 }
   0x2   :  { %s17_s13 = sshll.u32 %s224_s12, 4  ;;  %p177_p0 = scmp.ne.s32.totalorder %s286_s1, %s176_s16  ;;  %s18_s13 = int_to_ptr.vmem [resolvable:$true] %s17_s13 }
   0x3   :  { %p180_p1 = scmp.lt.u32.totalorder %s176_s16, %s286_s1 }
   0x5   :  { %p182_p2 = pnand %p180_p1, %p177_p0 }
   0x7   :  { %185 = shalt.err (!%p182_p2)
}
   0x8   :  { %s186_s21 = scalar_lea.vmem %s18_s13, 256  ;;  %p191_p4 = scmp.lt.s32.totalorder %s18_s13, %s18_s13 }
   0x9   :  { %p187_p3 = scmp.ne.s32.totalorder %s18_s13, %s186_s21  ;;  %p192_p5 = scmp.lt.s32.totalorder %s186_s21, %s186_s21 }
   0xb   :  { %p193_p6 = por %p192_p5, %p191_p4 }
   0xd   :  { %p194_p7 = pnand %p193_p6, %p187_p3 }
   0xf   :  { %197 = shalt.err (!%p194_p7)
}
  0x10   :  { %s225_s22 = smov 128   ;;  %s226_s23 = smov 8  }
  0x11   :  { %23 = dma.hbm_to_vmem [thread:$0]  %s286_s1, 256, %s18_s13, [#allocation3], %s225_s22, %s225_s22, %s226_s23  }
  0x12   :  { %220 = dma.done.wait [#allocation3], 256  }
  0x13   :  { %221 = vsyncadd [#allocation3], 4294967040  ;;  %v33_v0 = vld [vmem:[%s287_s2] sm:$0x77]  ;;  %v34_v1 = vld [vmem:[%s287_s2 + $0x8] sm:$0x77]  ;;  %v129_v60 = vlaneseq }
  0x14   :  { %v39_v2 = vand.u32 2147483647, %v33_v0  ;;  %v40_v3 = vand.u32 2147483647, %v34_v1  ;;  %vm47_vm0 = vcmask 1042432   ;;  %v29_v16 = vld [vmem:[%s285_s0] sm:$0xff] }
  0x15   :  { %v31_v17 = vld [vmem:[#allocation2] sm:$0xff]  ;;  %v30_v21 = vld [vmem:[%s285_s0 + $0x8] sm:$0xff]  ;;  %vm92_vm1 = vcmask 1043456   ;;  %v227_v58 = vmov 1983009808   ;;  %vm146_vm2 = vcmask 1041409  }
  0x16   :  { %v43_v4 = vcombine.high %v39_v2, %v39_v2  ;;  %v44_v5 = vcombine.high %v40_v3, %v40_v3  ;;  %v48_v6 = vsel %vm47_vm0, %v39_v2, 0.0  ;;  %v62_v8 = vsel %vm47_vm0, %v40_v3, 0.0  ;;  %v32_v22 = vld [vmem:[#allocation2 + $0x8] sm:$0xff]  ;;  %s228_s0 = smov [#allocation5]  }
  0x17   :  { %v49_v7 = vrot.slane %v48_v6, 4  ;;  %v63_v10 = vrot.slane %v62_v8, 4  ;;  %v35_v27 = vsub.f32 %v29_v16, %v31_v17  ;;  %v36_v29 = vsub.f32 %v30_v21, %v32_v22  ;;  %s162_s5 = sshll.u32 %s228_s0, 4  ;;  %s163_s5 = int_to_ptr.vmem [resolvable:$true] %s162_s5 }
  0x18   :  { %v55_v9 = vsel %vm47_vm0, %v43_v4, 0.0  ;;  %v69_v11 = vsel %vm47_vm0, %v44_v5, 0.0  ;;  %v127_v59 = vunpack.c.l.s4 %v227_v58  ;;  %vm148_vm3 = vcmask 1043459   ;;  %s198_s6 = scalar_lea.vmem %s163_s5, 64  ;;  %p203_p9 = scmp.lt.s32.totalorder %s163_s5, %s163_s5 }
  0x19   :  { %v50_v12 = vadd.f32 %v49_v7, %v48_v6  ;;  %v56_v13 = vrot.slane %v55_v9, 4  ;;  %v70_v14 = vrot.slane %v69_v11, 4  ;;  %v64_v15 = vadd.f32 %v63_v10, %v62_v8  ;;  %p199_p8 = scmp.ne.s32.totalorder %s163_s5, %s198_s6  ;;  %p204_p10 = scmp.lt.s32.totalorder %s198_s6, %s198_s6 }
  0x1a   :  { %v37_v38 = vand.u32 2147483647, %v35_v27  ;;  %v38_v39 = vand.u32 2147483647, %v36_v29  ;;  %v128_v5 = vunpack.c.0.s8 %v127_v59  ;;  %v130_v6 = vshrl.u32 %v129_v60, 7 }
  0x1b   :  { %v51_v18 = vrot.slane %v50_v12, 2  ;;  %v57_v19 = vadd.f32 %v56_v13, %v55_v9  ;;  %v71_v20 = vadd.f32 %v70_v14, %v69_v11  ;;  %v65_v23 = vrot.slane %v64_v15, 2  ;;  %p205_p11 = por %p204_p10, %p203_p9 }
  0x1c   :  { %v131_v17 = vsub.s32 %v128_v5, %v130_v6  ;;  %vm150_vm4 = vcmask 1045509   ;;  %vm152_vm5 = vcmask 1047559  }
  0x1d   :  { %v52_v24 = vadd.f32 %v51_v18, %v50_v12  ;;  %v58_v25 = vrot.slane %v57_v19, 2  ;;  %v72_v26 = vrot.slane %v71_v20, 2  ;;  %v66_v28 = vadd.f32 %v65_v23, %v64_v15  ;;  %p206_p12 = pnand %p205_p11, %p199_p8 }
  0x1f   :  { %v53_v30 = vrot.slane %v52_v24, 1  ;;  %v59_v31 = vadd.f32 %v58_v25, %v57_v19  ;;  %v73_v32 = vadd.f32 %v72_v26, %v71_v20  ;;  %v67_v33 = vrot.slane %v66_v28, 1 }
  0x21   :  { %v54_v34 = vadd.f32 %v53_v30, %v52_v24  ;;  %v60_v35 = vrot.slane %v59_v31, 1  ;;  %v74_v36 = vrot.slane %v73_v32, 1  ;;  %v68_v37 = vadd.f32 %v67_v33, %v66_v28 }
  0x23   :  { %v61_v40 = vadd.f32 %v60_v35, %v59_v31  ;;  %v75_v41 = vadd.f32 %v74_v36, %v73_v32 }
  0x25   :  { %v80_v42 = vcombine.low %v54_v34, %v61_v40  ;;  %v81_v43 = vcombine.low %v68_v37, %v75_v41 }
  0x27   :  { %v84_v44 = vmul.f32 %v80_v42, %v37_v38  ;;  %v85_v45 = vmul.f32 %v81_v43, %v38_v39 }
  0x29   :  { %v88_v46 = vcombine.high %v84_v44, %v84_v44  ;;  %v89_v47 = vcombine.high %v85_v45, %v85_v45  ;;  %v93_v48 = vsel %vm92_vm1, %v84_v44, 0.0  ;;  %v107_v49 = vsel %vm92_vm1, %v85_v45, 0.0 }
  0x2a   :  { %v94_v50 = vrot.slane %v93_v48, 4  ;;  %v108_v51 = vrot.slane %v107_v49, 4 }
  0x2b   :  { %v100_v52 = vsel %vm92_vm1, %v88_v46, 0.0  ;;  %v114_v53 = vsel %vm92_vm1, %v89_v47, 0.0 }
  0x2c   :  { %v95_v54 = vadd.f32 %v94_v50, %v93_v48  ;;  %v101_v55 = vrot.slane %v100_v52, 4  ;;  %v109_v56 = vadd.f32 %v108_v51, %v107_v49  ;;  %v115_v57 = vrot.slane %v114_v53, 4 }
  0x2e   :  { %v96_v61 = vrot.slane %v95_v54, 2  ;;  %v102_v62 = vadd.f32 %v101_v55, %v100_v52  ;;  %v110_v63 = vrot.slane %v109_v56, 2  ;;  %v116_v0 = vadd.f32 %v115_v57, %v114_v53 }
  0x30   :  { %v97_v1 = vadd.f32 %v96_v61, %v95_v54  ;;  %v103_v2 = vrot.slane %v102_v62, 2  ;;  %v111_v3 = vadd.f32 %v110_v63, %v109_v56  ;;  %v117_v4 = vrot.slane %v116_v0, 2 }
  0x32   :  { %v98_v7 = vrot.slane %v97_v1, 1  ;;  %v104_v8 = vadd.f32 %v103_v2, %v102_v62  ;;  %v112_v9 = vrot.slane %v111_v3, 1  ;;  %v118_v10 = vadd.f32 %v117_v4, %v116_v0 }
  0x34   :  { %v99_v11 = vadd.f32 %v98_v7, %v97_v1  ;;  %v105_v12 = vrot.slane %v104_v8, 1  ;;  %v113_v13 = vadd.f32 %v112_v9, %v111_v3  ;;  %v119_v14 = vrot.slane %v118_v10, 1 }
  0x36   :  { %v106_v15 = vadd.f32 %v105_v12, %v104_v8  ;;  %v120_v16 = vadd.f32 %v119_v14, %v118_v10 }
  0x38   :  { %v125_v18 = vcombine.low %v99_v11, %v106_v15  ;;  %v133_v19 = vcombine.low %v113_v13, %v120_v16 }
  0x3a   :  { %v132_v20 = vrot.slane %v125_v18, %v131_v17  ;;  %v140_v21 = vrot.slane %v133_v19, %v131_v17 }
  0x3c   :  { %v145_v22 = vrot.slane %v140_v21, 7 }
  0x3e   :  { %v147_v23 = vsel %vm146_vm2, %v145_v22, %v132_v20 }
  0x3f   :  { %v149_v24 = vsel %vm148_vm3, %v145_v22, %v147_v23 }
  0x40   :  { %v151_v25 = vsel %vm150_vm4, %v145_v22, %v149_v24 }
  0x41   :  { %v153_v26 = vsel %vm152_vm5, %v145_v22, %v151_v25 }
  0x42   :  { %155 = vst [vmem:[#allocation5] sm:$0xf] %v153_v26 }
  0x43   :  { %209 = shalt.err (!%p206_p12)
}
  0x44   :  { %s210_s9 = scalar_lea.hbm %s288_s3, 64 }
  0x45   :  { %p211_p13 = scmp.ne.s32.totalorder %s288_s3, %s210_s9  ;;  %p214_p0 = scmp.lt.u32.totalorder %s210_s9, %s288_s3 }
  0x47   :  { %p216_p1 = pnand %p214_p0, %p211_p13 }
  0x49   :  { %219 = shalt.err (!%p216_p1)
}
  0x4a   :  { %165 = dma.vmem_to_hbm [thread:$0]  %s163_s5, 64, %s288_s3, [#allocation4]  }
  0x4b   :  { %222 = dma.done.wait [#allocation4], 64  }
  0x4c   :  { %223 = vsyncadd [#allocation4], 4294967232 }
  0x4d   :  { %169 = vsyncpa [#allocation3], 1 }
  0x4e   :  { %170 = vsyncpa [#allocation4], 1 }

</bundles_post_ra>
